<compile_context>
chip_gen: v7x
topology: tpu7x:2x2x1
jax: 0.10.0
libtpu: 0.0.40
codegen_flags: <defaults>
</compile_context>

<pallas_src>
import functools

import jax
import jax.numpy as jnp
from jax.experimental import pallas as pl
from jax.experimental.pallas import tpu as pltpu


def _round_up(v, m):
    return ((v + m - 1) // m) * m


def _pick_tile(dim_pad, t_max, unit):
    """Largest multiple of `unit` that divides dim_pad and is <= t_max."""
    best = unit
    t = unit
    limit = min(t_max, dim_pad)
    while t <= limit:
        if dim_pad % t == 0:
            best = t
        t += unit
    return best


# --------------------------------------------------------------------------
# Pallas kernel: (tm, tk) x (tk, tn) tile matmul, f32 accumulator scratch,
# bias add in f32, bf16 output store at the final K step.
# --------------------------------------------------------------------------
def _linear_kernel(x_ref, w_ref, b_ref, o_ref, acc_ref):
    # x_ref: (tm, tk) bf16   w_ref: (tk, tn) bf16   b_ref: (1, tn) f32
    # o_ref: (tm, tn) bf16   acc_ref: (tm, tn) f32 VMEM scratch
    k = pl.program_id(2)

    @pl.when(k == 0)
    def _():
        acc_ref[...] = jnp.zeros_like(acc_ref)

    acc_ref[...] += jnp.dot(
        x_ref[...], w_ref[...], preferred_element_type=jnp.float32
    )

    @pl.when(k == pl.num_programs(2) - 1)
    def _():
        o_ref[...] = (acc_ref[...] + b_ref[...]).astype(o_ref.dtype)


def pallas_linear(x2d, w_p, b_p, *, n_valid, tk, tn, tm_max=512):
    """y = x2d @ W^T + b using the cached padded operands.

    x2d: (M, K) f32/bf16 activation.
    w_p: (k_pad, n_pad) bf16, already transposed + zero-padded (cached).
    b_p: (1, n_pad) f32, zero-padded (cached).
    Returns (M, n_valid) bf16.
    """
    M, K = x2d.shape
    k_pad, n_pad = w_p.shape
    assert K <= k_pad and b_p.shape == (1, n_pad)
    assert k_pad % tk == 0 and n_pad % tn == 0

    # Sublane dim in multiples of 16 (bf16 packing), lane dims already 128-dense.
    tm = min(tm_max, _round_up(M, 16))
    m_pad = _round_up(M, tm)

    # Guarantee >= 2 "parallel" grid blocks for small-M shapes so a 2-TC chip
    # (v7x megacore) gets work; harmless on 1-TC parts.
    if m_pad // tm == 1 and n_pad // tn == 1 and n_pad >= 256:
        tn = _pick_tile(n_pad, n_pad // 2, 128)

    # Activation: cast to bf16; pad only when actually needed (common hidden
    # sizes are already multiples of 128 -> copy-free path).
    x_bf16 = x2d.astype(jnp.bfloat16)
    if M == m_pad and K == k_pad:
        x_p = x_bf16
    else:
        x_p = jnp.pad(x_bf16, ((0, m_pad - M), (0, k_pad - K)))

    grid = (m_pad // tm, n_pad // tn, k_pad // tk)

    # VMEM footprint (double-buffered inputs/output + f32 accumulator).
    vmem_need = (
        2 * tm * tk * 2      # x tiles (bf16)
        + 2 * tk * tn * 2    # w tiles (bf16)
        + 2 * tm * tn * 2    # out tiles (bf16)
        + tm * tn * 4        # acc scratch (f32)
        + 2 * tn * 4         # bias tiles (f32)
    )
    vmem_limit = min(max(32 * 1024 * 1024, 2 * vmem_need), 48 * 1024 * 1024)

    out = pl.pallas_call(
        _linear_kernel,
        out_shape=jax.ShapeDtypeStruct((m_pad, n_pad), jnp.bfloat16),
        grid_spec=pltpu.PrefetchScalarGridSpec(
            num_scalar_prefetch=0,
            grid=grid,
            in_specs=[
                pl.BlockSpec((tm, tk), lambda i, j, k: (i, k)),
                pl.BlockSpec((tk, tn), lambda i, j, k: (k, j)),
                pl.BlockSpec((1, tn), lambda i, j, k: (0, j)),
            ],
            out_specs=pl.BlockSpec((tm, tn), lambda i, j, k: (i, j)),
            scratch_shapes=[pltpu.VMEM((tm, tn), jnp.float32)],
        ),
        compiler_params=pltpu.CompilerParams(
            dimension_semantics=("parallel", "parallel", "arbitrary"),
            vmem_limit_bytes=vmem_limit,
        ),
        cost_estimate=pl.CostEstimate(
            flops=2 * m_pad * k_pad * n_pad,
            transcendentals=0,
            bytes_accessed=(
                m_pad * k_pad * 2 * (n_pad // tn)   # x re-read per j block
                + k_pad * n_pad * 2 * (m_pad // tm)  # w re-read per i block
                + n_pad * 4 * (m_pad // tm)          # bias
                + m_pad * n_pad * 2                  # out (bf16)
            ),
        ),
    )(x_p, w_p, b_p)

    return out[:M, :n_valid]


# Jitted end-to-end forward: (optional pad) -> pallas matmul -> slice ->
# reshape fuse into one dispatch.  Tile sizes / output width are static.
@functools.partial(jax.jit, static_argnames=("n_valid", "tk", "tn"))
def _ddp_linear_forward(x, w_p, b_p, *, n_valid, tk, tn):
    B, S, H = x.shape
    y2d = pallas_linear(x.reshape(B * S, H), w_p, b_p, n_valid=n_valid, tk=tk, tn=tn)
    return y2d.reshape(B, S, n_valid)


# --------------------------------------------------------------------------
# DistributedDataParallel wrapper (single-device JAX analogue)
# --------------------------------------------------------------------------
class DistributedDataParallelPallas:
    """Wraps an inner Linear module; forward == inner module forward.

    The gradient all-reduce hooks of the original module are backward-only
    and have no forward-pass compute; weight_broadcast from rank 0 is the
    identity on parameter values on a single device.
    """

    def __init__(self, w, b):
        # parameters of the wrapped nn.Linear(hidden, hidden):
        #   weight: (H_out, H_in), bias: (H_out,)
        self.w = jnp.asarray(w)
        self.b = jnp.asarray(b)
        self.N, self.K = self.w.shape          # out, in
        self.k_pad = _round_up(self.K, 128)
        self.n_pad = _round_up(self.N, 128)
        self.tk = _pick_tile(self.k_pad, 1024, 128)
        self.tn = _pick_tile(self.n_pad, 512, 128)
        self.first_call = True
        self.needs_reduction = False
        # Cache kernel-ready operands ONCE (padded, transposed, bf16 weight +
        # padded f32 bias) -- not rebuilt on every forward.
        self._prepare_params()
        # TODO(synk): backward-time gradient all-reduce hook has no
        # forward-pass equivalent (would be a psum over a device mesh).

    def _prepare_params(self):
        w_t = self.w.T.astype(jnp.bfloat16)                 # (K, N) bf16
        if (self.K, self.N) == (self.k_pad, self.n_pad):
            w_p = w_t
        else:
            w_p = jnp.zeros((self.k_pad, self.n_pad), jnp.bfloat16)
            w_p = w_p.at[: self.K, : self.N].set(w_t)
        b_p = jnp.zeros((1, self.n_pad), jnp.float32)
        b_p = b_p.at[:, : self.N].set(self.b.astype(jnp.float32).reshape(1, -1))
        self.w_p = w_p
        self.b_p = b_p

    def weight_broadcast(self):
        # TODO(synk): dist.broadcast across ranks; identity on a single TPU.
        self._prepare_params()

    def forward(self, x):
        if self.first_call:
            self.weight_broadcast()
            self.first_call = False
        self.needs_reduction = True
        # inner module forward: y = x @ W^T + b, computed in the Pallas kernel
        return _ddp_linear_forward(
            x, self.w_p, self.b_p, n_valid=self.N, tk=self.tk, tn=self.tn
        )

    __call__ = forward


if __name__ == "__main__":
    key = jax.random.PRNGKey(0)
    B, S, H = 2, 8, 32

    kx, kw, kb = jax.random.split(key, 3)
    x = jax.random.normal(kx, (B, S, H), dtype=jnp.float32)
    # deterministic Linear(H, H) parameters (PyTorch-style uniform init bound)
    bound = 1.0 / (H ** 0.5)
    w = jax.random.uniform(kw, (H, H), dtype=jnp.float32, minval=-bound, maxval=bound)
    b = jax.random.uniform(kb, (H,), dtype=jnp.float32, minval=-bound, maxval=bound)

    ddp = DistributedDataParallelPallas(w, b)
    y = ddp(x)
    y = jax.block_until_ready(y)

    # correctness checks against plain JAX references of the wrapped module
    assert y.shape == (B, S, H)
    assert y.dtype == jnp.bfloat16

    y_f32 = y.astype(jnp.float32)

    # matched-precision reference (bf16 operands, f32 accumulate + bias, bf16 out)
    y_ref_bf16 = (
        jnp.einsum(
            "bsh,ho->bso",
            x.astype(jnp.bfloat16),
            w.T.astype(jnp.bfloat16),
            preferred_element_type=jnp.float32,
        )
        + b
    ).astype(jnp.bfloat16).astype(jnp.float32)
    assert jnp.allclose(y_f32, y_ref_bf16, atol=1e-2, rtol=1e-2)

    # full-f32 reference (loose tolerance: kernel uses bf16 operands/output)
    y_ref_f32 = jnp.einsum("bsh,oh->bso", x, w) + b
    assert jnp.allclose(y_f32, y_ref_f32, atol=5e-2, rtol=5e-2)

    # second call: needs_reduction bookkeeping, no re-broadcast, same result
    y2 = jax.block_until_ready(ddp(x))
    assert ddp.needs_reduction
    assert jnp.array_equal(y, y2)

    print("KERNEL_OK")
</pallas_src>

<mosaic_0001>
module attributes {stable_mosaic.version = 11 : i64} {
  func.func @_linear_kernel(%arg0: i32, %arg1: i32, %arg2: i32, %arg3: memref<16x128xbf16, #tpu.memory_space<vmem>>, %arg4: memref<128x128xbf16, #tpu.memory_space<vmem>>, %arg5: memref<1x128xf32, #tpu.memory_space<vmem>>, %arg6: memref<16x128xbf16, #tpu.memory_space<vmem>>, %arg7: memref<16x128xf32, #tpu.memory_space<vmem>>) attributes {dimension_semantics = [#tpu.dimension_semantics<parallel>, #tpu.dimension_semantics<parallel>, #tpu.dimension_semantics<arbitrary>], iteration_bounds = array<i64: 1, 1, 1>, scalar_prefetch = 0 : i64, scratch_operands = 1 : i64, tpu.core_type = #tpu.core_type<tc>, window_params = [{transform_indices = @transform_0, window_bounds = array<i64: 16, 128>}, {transform_indices = @transform_1, window_bounds = array<i64: 128, 128>}, {transform_indices = @transform_2, window_bounds = array<i64: 1, 128>}, {transform_indices = @transform_3, window_bounds = array<i64: 16, 128>}]} {
    %c0_i32 = arith.constant 0 : i32
    %0 = arith.cmpi eq, %arg2, %c0_i32 : i32
    %1 = arith.extui %0 : i1 to i32
    %c0_i32_0 = arith.constant 0 : i32
    %2 = arith.cmpi ne, %1, %c0_i32_0 : i32
    scf.if %2 {
      %cst_10 = arith.constant 0.000000e+00 : f32
      %12 = vector.broadcast %cst_10 : f32 to vector<16x128xf32>
      %c0_11 = arith.constant 0 : index
      %c0_12 = arith.constant 0 : index
      %13 = vector.load %arg7[%c0_11, %c0_12] : memref<16x128xf32, #tpu.memory_space<vmem>>, vector<16x128xf32>
      tpu.vector_store %arg7[%c0_11, %c0_12], %12 {strides = array<i32>} : memref<16x128xf32, #tpu.memory_space<vmem>>, vector<16x128xf32>,
    } else {
    }
    %c0 = arith.constant 0 : index
    %c0_1 = arith.constant 0 : index
    %3 = vector.load %arg7[%c0, %c0_1] : memref<16x128xf32, #tpu.memory_space<vmem>>, vector<16x128xf32>
    %c0_2 = arith.constant 0 : index
    %c0_3 = arith.constant 0 : index
    %4 = vector.load %arg3[%c0_2, %c0_3] : memref<16x128xbf16, #tpu.memory_space<vmem>>, vector<16x128xbf16>
    %c0_4 = arith.constant 0 : index
    %c0_5 = arith.constant 0 : index
    %5 = vector.load %arg4[%c0_4, %c0_5] : memref<128x128xbf16, #tpu.memory_space<vmem>>, vector<128x128xbf16>
    %cst = arith.constant dense<0.000000e+00> : vector<16x128xf32>
    %6 = tpu.matmul %4, %5, %cst {dimension_numbers = #tpu.dot_dimension_numbers<[1], [0], [0], [1], [0, 0, 1, 1], [], []>} : vector<16x128xbf16>, vector<128x128xbf16>, vector<16x128xf32> -> vector<16x128xf32>
    %7 = arith.addf %3, %6 : vector<16x128xf32>
    %c0_6 = arith.constant 0 : index
    %c0_7 = arith.constant 0 : index
    %8 = vector.load %arg7[%c0_6, %c0_7] : memref<16x128xf32, #tpu.memory_space<vmem>>, vector<16x128xf32>
    tpu.vector_store %arg7[%c0_6, %c0_7], %7 {strides = array<i32>} : memref<16x128xf32, #tpu.memory_space<vmem>>, vector<16x128xf32>,
    %c0_i32_8 = arith.constant 0 : i32
    %9 = arith.cmpi eq, %arg2, %c0_i32_8 : i32
    %10 = arith.extui %9 : i1 to i32
    %c0_i32_9 = arith.constant 0 : i32
    %11 = arith.cmpi ne, %10, %c0_i32_9 : i32
    scf.if %11 {
      %c0_10 = arith.constant 0 : index
      %c0_11 = arith.constant 0 : index
      %12 = vector.load %arg7[%c0_10, %c0_11] : memref<16x128xf32, #tpu.memory_space<vmem>>, vector<16x128xf32>
      %c0_12 = arith.constant 0 : index
      %c0_13 = arith.constant 0 : index
      %13 = vector.load %arg5[%c0_12, %c0_13] : memref<1x128xf32, #tpu.memory_space<vmem>>, vector<1x128xf32>
      %14 = vector.broadcast %13 : vector<1x128xf32> to vector<16x128xf32>
      %15 = arith.addf %12, %14 : vector<16x128xf32>
      %16 = arith.truncf %15 : vector<16x128xf32> to vector<16x128xbf16>
      %c0_14 = arith.constant 0 : index
      %c0_15 = arith.constant 0 : index
      %17 = vector.load %arg6[%c0_14, %c0_15] : memref<16x128xbf16, #tpu.memory_space<vmem>>, vector<16x128xbf16>
      tpu.vector_store %arg6[%c0_14, %c0_15], %16 {strides = array<i32>} : memref<16x128xbf16, #tpu.memory_space<vmem>>, vector<16x128xbf16>,
    } else {
    }
    return
  }
  func.func @transform_0(%arg0: i32, %arg1: i32, %arg2: i32) -> (i32, i32) {
    %c0_i32 = arith.constant 0 : i32
    return %arg0, %arg2 : i32, i32
  }
  func.func @transform_1(%arg0: i32, %arg1: i32, %arg2: i32) -> (i32, i32) {
    %c0_i32 = arith.constant 0 : i32
    return %arg2, %arg1 : i32, i32
  }
  func.func @transform_2(%arg0: i32, %arg1: i32, %arg2: i32) -> (i32, i32) {
    %c0_i32 = arith.constant 0 : i32
    %c0_i32_0 = arith.constant 0 : i32
    return %c0_i32, %arg1 : i32, i32
  }
  func.func @transform_3(%arg0: i32, %arg1: i32, %arg2: i32) -> (i32, i32) {
    %c0_i32 = arith.constant 0 : i32
    return %arg0, %arg1 : i32, i32
  }
}

</mosaic_0001>

<bundles_post_ra>
// kernel: _ddp_linear_forward.1
= control target key start
LH: loop header
LB: loop body
LE: loop exit
PB: predicated region body
PF: predicated region fallthrough
CT: control target
= control target key end

     0   :  { %8 = vsyncpa [#allocation4], 0  ;;  %s269_s12 = smov [#allocation3]   ;;  %s315_s0 = inlined_call_operand.vmem [shape: bf16[16,128], index: 0, kind: input, shape index: {}]   ;;  %s316_s1 = inlined_call_operand.hbm [shape: bf16[128,128], index: 1, kind: input, shape index: {}]   ;;  %s317_s2 = inlined_call_operand.vmem [shape: f32[1,128], index: 2, kind: input, shape index: {}]   ;;  %s318_s3 = inlined_call_operand.vmem [shape: bf16[16,128], index: 3, kind: output, shape index: {}]  }
   0x1   :  { %s16_s13 = sshll.u32 %s269_s12, 4  ;;  %s245_s16 = scalar_lea.hbm %s316_s1, 1024  ;;  %s17_s13 = int_to_ptr.vmem [resolvable:$true] %s16_s13 }
   0x2   :  { %p246_p0 = scmp.ne.s32.totalorder %s316_s1, %s245_s16  ;;  %p249_p1 = scmp.lt.u32.totalorder %s245_s16, %s316_s1 }
   0x4   :  { %p251_p2 = pnand %p249_p1, %p246_p0 }
   0x6   :  { %254 = shalt.err (!%p251_p2)
}
   0x7   :  { %s255_s21 = scalar_lea.vmem %s17_s13, 1024  ;;  %p260_p4 = scmp.lt.s32.totalorder %s17_s13, %s17_s13 }
   0x8   :  { %p256_p3 = scmp.ne.s32.totalorder %s17_s13, %s255_s21  ;;  %p261_p5 = scmp.lt.s32.totalorder %s255_s21, %s255_s21 }
   0xa   :  { %p262_p6 = por %p261_p5, %p260_p4 }
   0xc   :  { %p263_p7 = pnand %p262_p6, %p256_p3 }
   0xe   :  { %266 = shalt.err (!%p263_p7)
}
   0xf   :  { %s270_s22 = smov 64   ;;  %s271_s23 = smov 4  }
  0x10   :  { %22 = dma.hbm_to_vmem [thread:$0]  %s316_s1, 1024, %s17_s13, [#allocation4], %s270_s22, %s270_s22, %s271_s23  }
  0x11   :  { %267 = dma.done.wait [#allocation4], 1024  }
  0x12   :  { %268 = vsyncadd [#allocation4], 4294966272  ;;  %v272_v0 = vmov 0.0   ;;  %vm273_vm0 = vmmov 0   ;;  %v236_v1 = vld [vmem:[#allocation3] sm:$0xff]   ;;  %v237_v2 = vld [vmem:[#allocation3 + $0x8] sm:$0xff]  }
  0x13   :  { %211 = vmatprep.subr.bf16.mxu0 %v272_v0  ;;  %227 = vmatprep.mubr.msk.bf16.mxu0 %vm273_vm0, %v272_v0  ;;  %v238_v3 = vld [vmem:[#allocation3 + $0x10] sm:$0xff]   ;;  %v239_v4 = vld [vmem:[#allocation3 + $0x18] sm:$0xff]   ;;  %v240_v5 = vld [vmem:[#allocation3 + $0x20] sm:$0xff]  }
  0x14   :  { %212 = vmatpush3.bf16.msra.mxu0 %v236_v1  ;;  %v241_v6 = vld [vmem:[#allocation3 + $0x28] sm:$0xff]   ;;  %v242_v7 = vld [vmem:[#allocation3 + $0x30] sm:$0xff]   ;;  %v243_v8 = vld [vmem:[#allocation3 + $0x38] sm:$0xff]  }
  0x15   :  { %213 = vmatprep.subr.bf16.mxu0 %v272_v0  ;;  %v244_v9 = vld [vmem:[%s315_s0] sm:$0xff]  }
  0x16   :  { %v192_v11 = vld [vmem:[%s317_s2] ss:$0 sm:$0xff] }
  0x18   :  { %214 = vmatpush3.bf16.msra.mxu0 %v237_v2 }
  0x19   :  { %215 = vmatprep.subr.bf16.mxu0 %v272_v0 }
  0x1c   :  { %216 = vmatpush3.bf16.msra.mxu0 %v238_v3 }
  0x1d   :  { %217 = vmatprep.subr.bf16.mxu0 %v272_v0 }
  0x20   :  { %218 = vmatpush3.bf16.msra.mxu0 %v239_v4 }
  0x21   :  { %219 = vmatprep.subr.bf16.mxu0 %v272_v0 }
  0x24   :  { %220 = vmatpush3.bf16.msra.mxu0 %v240_v5 }
  0x25   :  { %221 = vmatprep.subr.bf16.mxu0 %v272_v0 }
  0x28   :  { %222 = vmatpush3.bf16.msra.mxu0 %v241_v6 }
  0x29   :  { %223 = vmatprep.subr.bf16.mxu0 %v272_v0 }
  0x2c   :  { %224 = vmatpush3.bf16.msra.mxu0 %v242_v7 }
  0x2d   :  { %225 = vmatprep.subr.bf16.mxu0 %v272_v0 }
  0x30   :  { %226 = vmatpush3.bf16.msra.mxu0 %v243_v8 }
  0x33   :  { %228 = vmatmul.mubr.bf16.vlgmr.msra.gmra.mrb[0].mxu0 %v244_v9 }
 0x106   :  { %v143_v10 = vpop.f32.mrb[0].mxu0 }
 0x107   :  { %v229_v12 = vpop.f32.mrb[1].mxu0  ;;  %v166_v14 = vadd.f32 %v192_v11, %v143_v10 }
 0x108   :  { %v146_v13 = vpop.f32.mrb[2].mxu0 }
 0x109   :  { %v167_v15 = vadd.f32 %v192_v11, %v146_v13  ;;  %v230_v16 = vpop.f32.mrb[3].mxu0 }
 0x10b   :  { %v200_v17 = vpack.c.bf16 %v167_v15, %v166_v14 }
 0x10d   :  { %201 = vst [vmem:[%s318_s3] sm:$0xff] %v200_v17  }
 0x10e   :  { %182 = vsyncpa [#allocation4], 1 }

</bundles_post_ra>
